<compile_context>
chip_gen: v7x
topology: tpu7x:2x2x1
jax: 0.10.0
libtpu: 0.0.40
codegen_flags: <defaults>
</compile_context>

<pallas_src>
import jax
import jax.numpy as jnp
from jax.experimental import pallas as pl
from jax.experimental.pallas import tpu as pltpu


def _round_up(x: int, m: int) -> int:
    return ((x + m - 1) // m) * m


def two_mlp_head_kernel(x_ref, w6_ref, b6_ref, w7_ref, b7_ref, o_ref):
    # Cast the streamed activation tile to the compute dtype in-VMEM.
    x = x_ref[...].astype(w6_ref.dtype)
    # fc6: (TM, K) @ (K, R) -> (TM, R), f32 accumulation on the MXU.
    h = jnp.dot(x, w6_ref[...], preferred_element_type=jnp.float32)
    h = jnp.maximum(h + b6_ref[...], 0.0)
    # fc7: (TM, R) @ (R, R) -> (TM, R); intermediate never leaves VMEM.
    h2 = jnp.dot(h.astype(w7_ref.dtype), w7_ref[...],
                 preferred_element_type=jnp.float32)
    o_ref[...] = jnp.maximum(h2 + b7_ref[...], 0.0).astype(o_ref.dtype)


def prepare_two_mlp_head_params(w6, b6, w7, b7, compute_dtype=jnp.bfloat16):
    """One-time parameter prep (call once at setup, NOT per forward pass).

    Inputs are PyTorch nn.Linear layout: w6 (rep, in_features), w7 (rep, rep).
    Returns bf16 weights pre-transposed to (in, out) and 2-D f32 biases.
    """
    w6_t = jnp.asarray(w6).astype(compute_dtype).T        # (in_features, rep)
    w7_t = jnp.asarray(w7).astype(compute_dtype).T        # (rep, rep)
    b6_2d = jnp.asarray(b6).astype(jnp.float32).reshape(1, -1)
    b7_2d = jnp.asarray(b7).astype(jnp.float32).reshape(1, -1)
    return w6_t, b6_2d, w7_t, b7_2d


def two_mlp_head(x, w6_t, b6_2d, w7_t, b7_2d, *, tm: int = 256,
                 out_dtype=jnp.float32):
    """x: (N, C, H, W) or (N, in_features); params from
    prepare_two_mlp_head_params. Returns (N, rep) in out_dtype."""
    n = x.shape[0]
    in_features, rep = w6_t.shape
    # Row-major flatten — identical to torch .flatten(start_dim=1). No dtype
    # cast here (that would be an extra un-hidden HBM pass).
    x_flat = x.reshape(n, in_features)

    # Tile over the RoI dim.  Shrink the tile so the grid has >=2 steps when N
    # permits (both v7x TensorCores get work under "parallel"); keep the 8-row
    # sublane granule.  The ragged final block is handled by Pallas (masked
    # writeback), so no padding copy is needed.
    tm_eff = max(8, min(tm, _round_up(pl.cdiv(n, 2), 8)))
    grid = (pl.cdiv(n, tm_eff),)

    bpe_w = jnp.dtype(w6_t.dtype).itemsize
    bpe_x = jnp.dtype(x_flat.dtype).itemsize
    bpe_o = jnp.dtype(out_dtype).itemsize
    # Resident weights/biases are single-buffered (pl.Buffered(1)); the x and
    # out tiles are double-buffered by the default pipeline.
    weight_bytes = (in_features * rep + rep * rep) * bpe_w + 2 * rep * 4
    stream_bytes = 2 * tm_eff * in_features * bpe_x + 2 * tm_eff * rep * bpe_o
    # Cap at 60 MiB so the plan fits v7x's 64 MiB/TC physical VMEM.
    vmem_limit = min(weight_bytes + stream_bytes + (4 << 20), 60 << 20)

    n_rows = grid[0] * tm_eff
    cost = pl.CostEstimate(
        flops=2 * n_rows * rep * (in_features + rep),
        transcendentals=0,
        bytes_accessed=(n * in_features * bpe_x
                        + (in_features * rep + rep * rep) * bpe_w
                        + 2 * rep * 4
                        + n * rep * bpe_o),
    )

    def _resident(shape):
        # Constant index_map + single buffer: fetched once, stays VMEM-resident.
        return pl.BlockSpec(shape, lambda i: (0, 0),
                            pipeline_mode=pl.Buffered(1))

    out = pl.pallas_call(
        two_mlp_head_kernel,
        out_shape=jax.ShapeDtypeStruct((n, rep), out_dtype),
        grid_spec=pltpu.PrefetchScalarGridSpec(
            num_scalar_prefetch=0,
            grid=grid,
            in_specs=[
                # Activation tile streams over the grid (double-buffered).
                pl.BlockSpec((tm_eff, in_features), lambda i: (i, 0)),
                # Weights / biases: VMEM-resident, single-buffered.
                _resident((in_features, rep)),
                _resident((1, rep)),
                _resident((rep, rep)),
                _resident((1, rep)),
            ],
            out_specs=pl.BlockSpec((tm_eff, rep), lambda i: (i, 0)),
        ),
        compiler_params=pltpu.CompilerParams(
            dimension_semantics=("parallel",),   # shards RoI tiles across TCs on v7x
            vmem_limit_bytes=int(vmem_limit),
        ),
        cost_estimate=cost,
    )(x_flat, w6_t, b6_2d, w7_t, b7_2d)

    return out


def _reference(x, w6, b6, w7, b7):
    xf = x.reshape(x.shape[0], -1)
    h = jnp.maximum(xf @ w6.T + b6, 0.0)
    return jnp.maximum(h @ w7.T + b7, 0.0)


if __name__ == "__main__":
    # Small shapes consistent with the module: in_channels = C*H*W.
    N, C, H, W = 16, 4, 16, 16
    in_channels = C * H * W          # 1024
    representation_size = 128

    key = jax.random.PRNGKey(0)
    kx, k6w, k6b, k7w, k7b = jax.random.split(key, 5)

    x = jax.random.normal(kx, (N, C, H, W), dtype=jnp.float32)
    # Deterministic synthetic parameters (PyTorch Linear layout: (out, in)).
    w6 = jax.random.normal(k6w, (representation_size, in_channels),
                           dtype=jnp.float32) * 0.02
    b6 = jax.random.normal(k6b, (representation_size,), dtype=jnp.float32) * 0.01
    w7 = jax.random.normal(k7w, (representation_size, representation_size),
                           dtype=jnp.float32) * 0.02
    b7 = jax.random.normal(k7b, (representation_size,), dtype=jnp.float32) * 0.01

    # One-time parameter prep (outside the hot path).
    params = prepare_two_mlp_head_params(w6, b6, w7, b7)

    out = two_mlp_head(x, *params)
    out = jax.block_until_ready(out)

    ref = _reference(x, w6, b6, w7, b7)
    assert out.shape == (N, representation_size)
    # bf16 matmul operands with f32 accumulation -> loosened tolerance vs f32.
    assert jnp.allclose(out, ref, atol=3e-2, rtol=3e-2)

    print("KERNEL_OK")
</pallas_src>

<mosaic_0001>
module attributes {stable_mosaic.version = 11 : i64} {
  func.func @two_mlp_head_kernel(%arg0: i32, %arg1: memref<8x1024xf32, #tpu.memory_space<vmem>>, %arg2: memref<1024x128xbf16, #tpu.memory_space<vmem>>, %arg3: memref<1x128xf32, #tpu.memory_space<vmem>>, %arg4: memref<128x128xbf16, #tpu.memory_space<vmem>>, %arg5: memref<1x128xf32, #tpu.memory_space<vmem>>, %arg6: memref<8x128xf32, #tpu.memory_space<vmem>>) attributes {dimension_semantics = [#tpu.dimension_semantics<parallel>], iteration_bounds = array<i64: 2>, scalar_prefetch = 0 : i64, scratch_operands = 0 : i64, tpu.core_type = #tpu.core_type<tc>, window_params = [{transform_indices = @transform_0, window_bounds = array<i64: 8, 1024>}, {pipeline_mode = #tpu.pipeline_mode<synchronous>, transform_indices = @transform_1, window_bounds = array<i64: 1024, 128>}, {pipeline_mode = #tpu.pipeline_mode<synchronous>, transform_indices = @transform_2, window_bounds = array<i64: 1, 128>}, {pipeline_mode = #tpu.pipeline_mode<synchronous>, transform_indices = @transform_3, window_bounds = array<i64: 128, 128>}, {pipeline_mode = #tpu.pipeline_mode<synchronous>, transform_indices = @transform_4, window_bounds = array<i64: 1, 128>}, {transform_indices = @transform_5, window_bounds = array<i64: 8, 128>}]} {
    %c0 = arith.constant 0 : index
    %c0_0 = arith.constant 0 : index
    %0 = vector.load %arg1[%c0, %c0_0] : memref<8x1024xf32, #tpu.memory_space<vmem>>, vector<8x1024xf32>
    %1 = arith.truncf %0 : vector<8x1024xf32> to vector<8x1024xbf16>
    %c0_1 = arith.constant 0 : index
    %c0_2 = arith.constant 0 : index
    %2 = vector.load %arg2[%c0_1, %c0_2] : memref<1024x128xbf16, #tpu.memory_space<vmem>>, vector<1024x128xbf16>
    %cst = arith.constant dense<0.000000e+00> : vector<8x128xf32>
    %3 = tpu.matmul %1, %2, %cst {dimension_numbers = #tpu.dot_dimension_numbers<[1], [0], [0], [1], [0, 0, 1, 1], [], []>} : vector<8x1024xbf16>, vector<1024x128xbf16>, vector<8x128xf32> -> vector<8x128xf32>
    %c0_3 = arith.constant 0 : index
    %c0_4 = arith.constant 0 : index
    %4 = vector.load %arg3[%c0_3, %c0_4] : memref<1x128xf32, #tpu.memory_space<vmem>>, vector<1x128xf32>
    %5 = vector.broadcast %4 : vector<1x128xf32> to vector<8x128xf32>
    %6 = arith.addf %3, %5 : vector<8x128xf32>
    %cst_5 = arith.constant 0.000000e+00 : f32
    %7 = vector.broadcast %cst_5 : f32 to vector<8x128xf32>
    %8 = arith.maximumf %6, %7 : vector<8x128xf32>
    %9 = arith.truncf %8 : vector<8x128xf32> to vector<8x128xbf16>
    %c0_6 = arith.constant 0 : index
    %c0_7 = arith.constant 0 : index
    %10 = vector.load %arg4[%c0_6, %c0_7] : memref<128x128xbf16, #tpu.memory_space<vmem>>, vector<128x128xbf16>
    %cst_8 = arith.constant dense<0.000000e+00> : vector<8x128xf32>
    %11 = tpu.matmul %9, %10, %cst_8 {dimension_numbers = #tpu.dot_dimension_numbers<[1], [0], [0], [1], [0, 0, 1, 1], [], []>} : vector<8x128xbf16>, vector<128x128xbf16>, vector<8x128xf32> -> vector<8x128xf32>
    %c0_9 = arith.constant 0 : index
    %c0_10 = arith.constant 0 : index
    %12 = vector.load %arg5[%c0_9, %c0_10] : memref<1x128xf32, #tpu.memory_space<vmem>>, vector<1x128xf32>
    %13 = vector.broadcast %12 : vector<1x128xf32> to vector<8x128xf32>
    %14 = arith.addf %11, %13 : vector<8x128xf32>
    %cst_11 = arith.constant 0.000000e+00 : f32
    %15 = vector.broadcast %cst_11 : f32 to vector<8x128xf32>
    %16 = arith.maximumf %14, %15 : vector<8x128xf32>
    %c0_12 = arith.constant 0 : index
    %c0_13 = arith.constant 0 : index
    %17 = vector.load %arg6[%c0_12, %c0_13] : memref<8x128xf32, #tpu.memory_space<vmem>>, vector<8x128xf32>
    tpu.vector_store %arg6[%c0_12, %c0_13], %16 {strides = array<i32>} : memref<8x128xf32, #tpu.memory_space<vmem>>, vector<8x128xf32>,
    return
  }
  func.func @transform_0(%arg0: i32) -> (i32, i32) {
    %c0_i32 = arith.constant 0 : i32
    %c0_i32_0 = arith.constant 0 : i32
    return %arg0, %c0_i32 : i32, i32
  }
  func.func @transform_1(%arg0: i32) -> (i32, i32) {
    %c0_i32 = arith.constant 0 : i32
    %c0_i32_0 = arith.constant 0 : i32
    %c0_i32_1 = arith.constant 0 : i32
    return %c0_i32, %c0_i32_0 : i32, i32
  }
  func.func @transform_2(%arg0: i32) -> (i32, i32) {
    %c0_i32 = arith.constant 0 : i32
    %c0_i32_0 = arith.constant 0 : i32
    %c0_i32_1 = arith.constant 0 : i32
    return %c0_i32, %c0_i32_0 : i32, i32
  }
  func.func @transform_3(%arg0: i32) -> (i32, i32) {
    %c0_i32 = arith.constant 0 : i32
    %c0_i32_0 = arith.constant 0 : i32
    %c0_i32_1 = arith.constant 0 : i32
    return %c0_i32, %c0_i32_0 : i32, i32
  }
  func.func @transform_4(%arg0: i32) -> (i32, i32) {
    %c0_i32 = arith.constant 0 : i32
    %c0_i32_0 = arith.constant 0 : i32
    %c0_i32_1 = arith.constant 0 : i32
    return %c0_i32, %c0_i32_0 : i32, i32
  }
  func.func @transform_5(%arg0: i32) -> (i32, i32) {
    %c0_i32 = arith.constant 0 : i32
    %c0_i32_0 = arith.constant 0 : i32
    return %arg0, %c0_i32 : i32, i32
  }
}

</mosaic_0001>

<bundles_post_ra>
// kernel: tpu_custom_call.1
= control target key start
LH: loop header
LB: loop body
LE: loop exit
PB: predicated region body
PF: predicated region fallthrough
CT: control target
= control target key end

     0   :  { %10 = vsyncpa [#allocation3], 0  ;;  %s1978_s0 = inlined_call_operand.hbm [shape: f32[16,1024], index: 0, kind: input, shape index: {}]   ;;  %s1979_s1 = inlined_call_operand.hbm [shape: bf16[1024,128], index: 1, kind: input, shape index: {}]   ;;  %s1980_s2 = inlined_call_operand.vmem [shape: f32[1,128], index: 2, kind: input, shape index: {}]   ;;  %s1981_s3 = inlined_call_operand.hbm [shape: bf16[128,128], index: 3, kind: input, shape index: {}]   ;;  %s1982_s4 = inlined_call_operand.vmem [shape: f32[1,128], index: 4, kind: input, shape index: {}]   ;;  %s1983_s5 = inlined_call_operand.hbm [shape: f32[16,128], index: 5, kind: output, shape index: {}]  }
   0x1   :  { %12 = vsyncpa [#allocation3 + $0x1], 0 }
   0x2   :  { %13 = vsyncpa [#allocation6], 0 }
   0x3   :  { %14 = vsyncpa [#allocation4], 0 }
   0x4   :  { %16 = vsyncpa [#allocation4 + $0x1], 0  ;;  %s1732_s18 = smov 0   ;;  %s1734_s19 = smov 0  }
   0x5   :  { %s1736_s20 = smov 0   ;;  %s1738_s21 = smov 0  }
   0x6 LB: > { %s1753_s22 = sadd.s32 4294967295, %s1692_s21   ;;  %s1184_s23 = sadd.s32 4294967294, %s1692_s21   ;;  %s1692_s21 = sphi %s1738_s21, %s2003_s21   ;;  %s1688_s20 = sphi %s1736_s20, %s2002_s20   ;;  %s1684_s19 = sphi %s1734_s19, %s2001_s19   ;;  %s1680_s18 = sphi %s1732_s18, %s2000_s18  }
   0x7   : > { %p42_p0 = scmp.ne.s32.totalorder %s1684_s19, %s1680_s18  ;;  %p1984_p1 = scmp.eq.s32.totalorder %s1753_s22, 0 }
   0x8   : > { %p156_p3 = scmp.eq.s32.totalorder %s1184_s23, 1  ;;  %p1185_p5 = scmp.ge.s32.totalorder %s1692_s21, 1 }
   0x9   : > { %p1762_p4 = por %p1984_p1, %p42_p0  ;;  %p163_p7 = scmp.lt.s32.totalorder %s1692_s21, 3 }
   0xa   : > { %p1767_p6 = por %p156_p3, %p42_p0  ;;  %s1694_s27 = smov [#allocation5]  }
   0xb   : > { %s1987_s24 = scalar_select %p1762_p4, 1, 0 }
   0xc   : > { %s1988_s25 = scalar_select %p1767_p6, 1, 0 }
   0xd   : > { %p1772_p8 = pnand %p1185_p5, %p163_p7  ;;  %s175_s28 = sshll.u32 %s1694_s27, 4  ;;  %s1776_s28 = int_to_ptr.vmem [resolvable:$true] %s175_s28 }
   0xe   : > { %s1695_s30 = smov [#allocation7]   ;;  %s1536_s9 = scalar_lea.hbm %s1979_s1, 8192 }
   0xf   : > { %p1405_p9 = pneg %p1772_p8  ;;  %s191_s6 = sshll.u32 %s1695_s30, 4  ;;  %s1787_s6 = int_to_ptr.vmem [resolvable:$true] %s191_s6 }
  0x10   : > { %p1537_p12 = scmp.ne.s32.totalorder %s1979_s1, %s1536_s9  ;;  %p1543_p5 = scmp.lt.u32.totalorder %s1536_s9, %s1979_s1 }
  0x11   : > { %p1783_p11 = pnand %p1405_p9, %p1984_p1 }
  0x13   : > { %p1538_p13 = pneg %p1783_p11 }
  0x15   : > { %p1539_p0 = pnand %p1538_p13, %p1537_p12 }
  0x17   : > { %p1540_p3 = pneg %p1539_p0 }
  0x19   : > { %p1545_p7 = pnand %p1543_p5, %p1540_p3 }
  0x1b   : > { %1548 = shalt.err (!%p1545_p7)
}
  0x1c   : > { %s1549_s14 = scalar_lea.vmem %s1776_s28, 8192  ;;  %p1557_p2 = scmp.lt.s32.totalorder %s1776_s28, %s1776_s28 }
  0x1d   : > { %p1550_p9 = scmp.ne.s32.totalorder %s1776_s28, %s1549_s14  ;;  %p1558_p12 = scmp.lt.s32.totalorder %s1549_s14, %s1549_s14 }
  0x1f   : > { %p1552_p10 = pnand %p1550_p9, %p1538_p13  ;;  %p1559_p0 = por %p1558_p12, %p1557_p2 }
  0x21   : > { %p1553_p1 = pneg %p1552_p10 }
  0x23   : > { %p1560_p6 = pnand %p1559_p0, %p1553_p1 }
  0x25   : > { %1563 = shalt.err (!%p1560_p6)
}
  0x26   : > { %s1696_s15 = smov 64   ;;  %s1697_s16 = smov 4  }
  0x27   : > { %1408 = dma.hbm_to_vmem [thread:$0]  (!%p1783_p11), %s1979_s1, 8192, %s1776_s28, [#allocation6], %s1696_s15, %s1696_s15, %s1697_s16  }
  0x28   : > { %s1564_s7 = scalar_lea.hbm %s1981_s3, 1024 }
  0x29   : > { %p1565_p2 = scmp.ne.s32.totalorder %s1981_s3, %s1564_s7  ;;  %p1571_p10 = scmp.lt.u32.totalorder %s1564_s7, %s1981_s3 }
  0x2b   : > { %p1567_p1 = pnand %p1565_p2, %p1538_p13 }
  0x2d   : > { %p1568_p6 = pneg %p1567_p1 }
  0x2f   : > { %p1573_p3 = pnand %p1571_p10, %p1568_p6 }
  0x31   : > { %1576 = shalt.err (!%p1573_p3)
}
  0x32   : > { %s1577_s28 = scalar_lea.vmem %s1787_s6, 1024  ;;  %p1585_p12 = scmp.lt.s32.totalorder %s1787_s6, %s1787_s6 }
  0x33   : > { %p1578_p5 = scmp.ne.s32.totalorder %s1787_s6, %s1577_s28  ;;  %p1586_p0 = scmp.lt.s32.totalorder %s1577_s28, %s1577_s28 }
  0x35   : > { %p1580_p7 = pnand %p1578_p5, %p1538_p13  ;;  %p1587_p2 = por %p1586_p0, %p1585_p12 }
  0x37   : > { %p1581_p9 = pneg %p1580_p7 }
  0x39   : > { %p1588_p1 = pnand %p1587_p2, %p1581_p9 }
  0x3b   : > { %1591 = shalt.err (!%p1588_p1)
}
  0x3c   : > { %1411 = dma.hbm_to_vmem [thread:$0]  (!%p1783_p11), %s1981_s3, 1024, %s1787_s6, [#allocation6], %s1696_s15, %s1696_s15, %s1697_s16  }
  0x3d   : > { %s1842_s14 = sadd.s32 1, %s1692_s21   ;;  %s29_s29 = sadd.s32 1, %s1688_s20 }
  0x3e   : > { %s26_s17 = ssub.s32 %s1692_s21, %s1842_s14  ;;  %p36_p13 = scmp.ne.s32.totalorder %s1688_s20, %s1684_s19 }
  0x3f   : > { %p27_p6 = scmp.eq.s32.totalorder %s26_s17, 0  ;;  %p37_p10 = scmp.eq.s32.totalorder %s1692_s21, 0 }
  0x40   : > { %p1991_p3 = scmp.eq.s32.totalorder %s1753_s22, 1  ;;  %p1422_p7 = scmp.lt.s32.totalorder %s1692_s21, 2 }
  0x41   : > { %s1858_s27 = scalar_select %p27_p6, %s1688_s20, %s29_s29  }
  0x42   : > { %p1852_p5 = por %p1991_p3, %p36_p13  ;;  %p38_p9 = por %p37_p10, %p36_p13 }
  0x43   : > { %s208_s30 = sand.u32 1, %s1688_s20   ;;  %s1275_s6 = sshll.u32 %s1692_s21, 10 }
  0x44   : > { %s1992_s23 = scalar_select %p1852_p5, 1, 0 }
  0x45   : > { %s1189_s7 = sshll.u32 %s208_s30, 6  ;;  %s1865_s8 = scalar_lea.hbm %s1978_s0, %s1275_s6 }
  0x46   : > { %s212_s9 = scalar_lea.vmem [#allocation2], %s1189_s7  ;;  %p1869_p11 = pnand %p1422_p7, %p38_p9 }
  0x47   : > { %s220_s10 = sshll.u32 %s212_s9, 4  ;;  %s209_s28 = scalar_lea.sflag [#allocation3], %s208_s30  ;;  %s1867_s10 = int_to_ptr.vmem [resolvable:$true] %s220_s10 }
  0x48   : > { %s1592_s12 = scalar_lea.hbm %s1865_s8, 1024  ;;  %p1594_p0 = pneg %p1869_p11 }
  0x49   : > { %p1593_p12 = scmp.ne.s32.totalorder %s1865_s8, %s1592_s12  ;;  %s1597_s17 = scalar_lea.hbm %s1978_s0, 2048 }
  0x4a   : > { %p1598_p13 = scmp.lt.u32.totalorder %s1865_s8, %s1978_s0  ;;  %p1599_p6 = scmp.lt.u32.totalorder %s1597_s17, %s1592_s12 }
  0x4b   : > { %p1595_p2 = pnand %p1594_p0, %p1593_p12  ;;  %p1601_p3 = scmp.lt.u32.totalorder %s1592_s12, %s1865_s8 }
  0x4c   : > { %p1600_p10 = por %p1599_p6, %p1598_p13 }
  0x4d   : > { %p1596_p1 = pneg %p1595_p2 }
  0x4e   : > { %p1602_p7 = por %p1601_p3, %p1600_p10 }
  0x50   : > { %p1603_p9 = pnand %p1602_p7, %p1596_p1 }
  0x52   : > { %1606 = shalt.err (!%p1603_p9)
}
  0x53   : > { %s1607_s30 = scalar_lea.vmem %s1867_s10, 1024  ;;  %s1698_s15 = smov [#allocation2]  }
  0x54   : > { %p1608_p12 = scmp.ne.s32.totalorder %s1867_s10, %s1607_s30  ;;  %s1612_s16 = sshll.u32 %s1698_s15, 4  ;;  %s1613_s16 = int_to_ptr.vmem [resolvable:$false] %s1612_s16 }
  0x55   : > { %s1614_s9 = scalar_lea.vmem %s1613_s16, 2048  ;;  %p1615_p4 = scmp.lt.s32.totalorder %s1867_s10, %s1613_s16 }
  0x56   : > { %p1610_p2 = pnand %p1608_p12, %p1594_p0  ;;  %p1616_p13 = scmp.lt.s32.totalorder %s1614_s9, %s1607_s30 }
  0x58   : > { %p1611_p5 = pneg %p1610_p2  ;;  %p1617_p6 = por %p1616_p13, %p1615_p4 }
  0x5a   : > { %p1618_p10 = pnand %p1617_p6, %p1611_p5 }
  0x5c   : > { %1621 = shalt.err (!%p1618_p10)
}
  0x5d   : > { %1415 = dma.hbm_to_vmem [thread:$0]  (!%p1869_p11), %s1865_s8, 1024, %s1867_s10, %s209_s28  }
  0x5e   : > { %229 = sbr.rel (%p1772_p8) target bundleno = 624 (0x270), region = 40  ;;  %s1901_s12 = sand.u32 (!%p1772_p8), 1, %s1684_s19  }
  0x5f   : > { %s1193_s13 = sshll.u32 (!%p1772_p8), %s1901_s12, 6  ;;  %s232_s29 = scalar_lea.sflag (!%p1772_p8), [#allocation3], %s1901_s12 }
  0x60   : > { %s1905_s17 = scalar_lea.vmem (!%p1772_p8), [#allocation2], %s1193_s13  ;;  %p1994_p4 = scmp.ne.s32.totalorder (!%p1772_p8), %s1987_s24, 0 }
  0x65   : > { %1667 = dma.done.wait (%p1994_p4), %s232_s29, 1024  }
  0x66   : > { %1669 = vsyncadd (%p1994_p4), %s232_s29, 4294966272  ;;  %p1995_p5 = scmp.eq.s32.totalorder %s1753_s22, 0 }
  0x68   : > { %1671 = dma.done.wait (%p1995_p5), [#allocation6], 9216   ;;  %p1996_p8 = pmov %p1995_p5 }
  0x69   : > { %v1464_v0 = vld [vmem:[#allocation5 + $0x40] sm:$0xff]   ;;  %v1468_v4 = vld [vmem:[#allocation5 + $0x48] sm:$0xff]   ;;  %v1472_v8 = vld [vmem:[#allocation5 + $0x50] sm:$0xff]   ;;  %vm1700_vm0 = vmmov 0   ;;  %s1196_s8 = sshll.u32 %s1901_s12, 3  ;;  %s1272_s28 = sshll.u32 %s1753_s22, 7 }
  0x6a   : > { %1673 = vsyncadd (%p1996_p8), [#allocation6], 4294958080  ;;  %v1465_v1 = vld [vmem:[#allocation5 + $0xc0] sm:$0xff]   ;;  %1276 = vmatprep.subr.bf16.mxu0 %v1464_v0  ;;  %v1469_v5 = vld [vmem:[#allocation5 + $0xc8] sm:$0xff]   ;;  %s269_s7 = scalar_lea.vmem [#allocation8], %s1196_s8  ;;  %s1934_s16 = scalar_lea.hbm %s1983_s5, %s1272_s28 }
  0x6b   : > { %v1466_v2 = vld [vmem:[#allocation5] sm:$0xff]   ;;  %1298 = vmatprep.subr.bf16.mxu1 %v1465_v1  ;;  %v1470_v6 = vld [vmem:[#allocation5 + $0x8] sm:$0xff]   ;;  %v1473_v9 = vld [vmem:[#allocation5 + $0xd0] sm:$0xff]   ;;  %s1095_s6 = sshll.u32 %s269_s7, 4  ;;  %s1082_s9 = scalar_lea.sflag [#allocation4], %s1901_s12  ;;  %s1936_s6 = int_to_ptr.vmem [resolvable:$true] %s1095_s6 }
  0x6c   : > { %v1467_v3 = vld [vmem:[#allocation5 + $0x80] sm:$0xff]   ;;  %1277 = vmatpush3.bf16.msra.mxu0 %v1466_v2  ;;  %v1471_v7 = vld [vmem:[#allocation5 + $0x88] sm:$0xff]   ;;  %v1474_v10 = vld [vmem:[#allocation5 + $0x10] sm:$0xff]   ;;  %s1622_s22 = scalar_lea.vmem %s1936_s6, 128  ;;  %p1997_p0 = scmp.ne.s32.totalorder %s1992_s23, 0 }
  0x6d   : > { %1299 = vmatpush3.bf16.msra.mxu1 %v1467_v3  ;;  %1278 = vmatprep.subr.bf16.mxu0 %v1468_v4  ;;  %v1475_v11 = vld [vmem:[#allocation5 + $0x90] sm:$0xff]   ;;  %v1476_v12 = vld [vmem:[#allocation5 + $0x58] sm:$0xff]   ;;  %v1480_v16 = vld [vmem:[#allocation5 + $0x60] sm:$0xff]   ;;  %p1623_p11 = scmp.ne.s32.totalorder %s1936_s6, %s1622_s22  ;;  %s1701_s13 = smov [#allocation8]  }
  0x6e   : > { %1300 = vmatprep.subr.bf16.mxu1 %v1469_v5  ;;  %v1477_v13 = vld [vmem:[#allocation5 + $0xd8] sm:$0xff]   ;;  %v1481_v17 = vld [vmem:[#allocation5 + $0xe0] sm:$0xff]   ;;  %v1484_v20 = vld [vmem:[#allocation5 + $0x68] sm:$0xff]   ;;  %s1626_s29 = sshll.u32 %s1701_s13, 4  ;;  %s1627_s29 = int_to_ptr.vmem [resolvable:$false] %s1626_s29 }
  0x6f   : > { %v1478_v14 = vld [vmem:[#allocation5 + $0x18] sm:$0xff]   ;;  %v1482_v18 = vld [vmem:[#allocation5 + $0x20] sm:$0xff]   ;;  %v1485_v21 = vld [vmem:[#allocation5 + $0xe8] sm:$0xff]   ;;  %p1624_p1 = pnand %p1623_p11, %p1997_p0  ;;  %p1629_p7 = scmp.lt.s32.totalorder %s1936_s6, %s1627_s29 }
  0x70   : > { %1279 = vmatpush3.bf16.msra.mxu0 %v1470_v6  ;;  %v1479_v15 = vld [vmem:[#allocation5 + $0x98] sm:$0xff]   ;;  %v1483_v19 = vld [vmem:[#allocation5 + $0xa0] sm:$0xff]   ;;  %v1486_v22 = vld [vmem:[#allocation5 + $0x28] sm:$0xff]  }
  0x71   : > { %1301 = vmatpush3.bf16.msra.mxu1 %v1471_v7  ;;  %1280 = vmatprep.subr.bf16.mxu0 %v1472_v8  ;;  %v1487_v23 = vld [vmem:[#allocation5 + $0xa8] sm:$0xff]   ;;  %v1488_v24 = vld [vmem:[#allocation5 + $0x70] sm:$0xff]   ;;  %v1492_v28 = vld [vmem:[#allocation5 + $0x78] sm:$0xff]   ;;  %p1625_p3 = pneg %p1624_p1 }
  0x72   : > { %1302 = vmatprep.subr.bf16.mxu1 %v1473_v9  ;;  %v1489_v25 = vld [vmem:[#allocation5 + $0xf0] sm:$0xff]   ;;  %v1493_v29 = vld [vmem:[#allocation5 + $0xf8] sm:$0xff]   ;;  %v272_v32 = vld [vmem:[%s1905_s17 + $0x8] sm:$0xff] }
  0x73   : > { %v1490_v26 = vld [vmem:[#allocation5 + $0x30] sm:$0xff]   ;;  %v1494_v30 = vld [vmem:[#allocation5 + $0x38] sm:$0xff]   ;;  %v271_v34 = vld [vmem:[%s1905_s17] sm:$0xff]  ;;  %v280_v35 = vpack.c.bf16 %v272_v32, %v272_v32 }
  0x74   : > { %1281 = vmatpush3.bf16.msra.mxu0 %v1474_v10  ;;  %v1491_v27 = vld [vmem:[#allocation5 + $0xb0] sm:$0xff]   ;;  %v1495_v31 = vld [vmem:[#allocation5 + $0xb8] sm:$0xff]   ;;  %v279_v37 = vpack.c.bf16 %v271_v34, %v271_v34  ;;  %v1496_v40 = vld [vmem:[#allocation5 + $0x140] sm:$0xff]  }
  0x75   : > { %1303 = vmatpush3.bf16.msra.mxu1 %v1475_v11  ;;  %1282 = vmatprep.subr.bf16.mxu0 %v1476_v12  ;;  %v274_v33 = vld [vmem:[%s1905_s17 + $0x18] sm:$0xff]  ;;  %v273_v38 = vld [vmem:[%s1905_s17 + $0x10] sm:$0xff]  ;;  %v1497_v41 = vld [vmem:[#allocation5 + $0x1c0] sm:$0xff]  }
  0x76   : > { %1304 = vmatprep.subr.bf16.mxu1 %v1477_v13  ;;  %v282_v36 = vpack.c.bf16 %v274_v33, %v274_v33  ;;  %v281_v39 = vpack.c.bf16 %v273_v38, %v273_v38  ;;  %838 = vmatprep.mubr.bf16.mxu0 %v280_v35  ;;  %v1498_v42 = vld [vmem:[#allocation5 + $0x100] sm:$0xff]   ;;  %v1500_v44 = vld [vmem:[#allocation5 + $0x148] sm:$0xff]   ;;  %v1504_v48 = vld [vmem:[#allocation5 + $0x150] sm:$0xff]  }
  0x77   : > { %v1499_v43 = vld [vmem:[#allocation5 + $0x180] sm:$0xff]   ;;  %v1501_v45 = vld [vmem:[#allocation5 + $0x1c8] sm:$0xff]   ;;  %v1505_v49 = vld [vmem:[#allocation5 + $0x1d0] sm:$0xff]  }
  0x78   : > { %1283 = vmatpush3.bf16.msra.mxu0 %v1478_v14  ;;  %878 = vmatprep.mubr.bf16.mxu1 %v282_v36  ;;  %v1502_v46 = vld [vmem:[#allocation5 + $0x108] sm:$0xff]   ;;  %v1506_v50 = vld [vmem:[#allocation5 + $0x110] sm:$0xff]   ;;  %v1508_v52 = vld [vmem:[#allocation5 + $0x158] sm:$0xff]  }
  0x79   : > { %1305 = vmatpush3.bf16.msra.mxu1 %v1479_v15  ;;  %1284 = vmatprep.subr.bf16.mxu0 %v1480_v16  ;;  %v1503_v47 = vld [vmem:[#allocation5 + $0x188] sm:$0xff]   ;;  %v1507_v51 = vld [vmem:[#allocation5 + $0x190] sm:$0xff]   ;;  %v1509_v53 = vld [vmem:[#allocation5 + $0x1d8] sm:$0xff]  }
  0x7a   : > { %1306 = vmatprep.subr.bf16.mxu1 %v1481_v17  ;;  %v1510_v54 = vld [vmem:[#allocation5 + $0x118] sm:$0xff]   ;;  %v1512_v56 = vld [vmem:[#allocation5 + $0x160] sm:$0xff]   ;;  %v1516_v60 = vld [vmem:[#allocation5 + $0x168] sm:$0xff]   ;;  %v1699_v17 = vmov 0.0  }
  0x7b   : > { %v1511_v55 = vld [vmem:[#allocation5 + $0x198] sm:$0xff]   ;;  %v1513_v57 = vld [vmem:[#allocation5 + $0x1e0] sm:$0xff]   ;;  %v1517_v61 = vld [vmem:[#allocation5 + $0x1e8] sm:$0xff]  }
  0x7c   : > { %1285 = vmatpush3.bf16.msra.mxu0 %v1482_v18  ;;  %v1514_v58 = vld [vmem:[#allocation5 + $0x120] sm:$0xff]   ;;  %v1518_v62 = vld [vmem:[#allocation5 + $0x128] sm:$0xff]   ;;  %v1520_v0 = vld [vmem:[#allocation5 + $0x170] sm:$0xff]  }
  0x7d   : > { %1307 = vmatpush3.bf16.msra.mxu1 %v1483_v19  ;;  %1286 = vmatprep.subr.bf16.mxu0 %v1484_v20  ;;  %v1515_v59 = vld [vmem:[#allocation5 + $0x1a0] sm:$0xff]   ;;  %v1519_v63 = vld [vmem:[#allocation5 + $0x1a8] sm:$0xff]   ;;  %v1521_v1 = vld [vmem:[#allocation5 + $0x1f0] sm:$0xff]  }
  0x7e   : > { %1308 = vmatprep.subr.bf16.mxu1 %v1485_v21  ;;  %v1522_v2 = vld [vmem:[#allocation5 + $0x130] sm:$0xff]   ;;  %v1524_v4 = vld [vmem:[#allocation5 + $0x178] sm:$0xff]   ;;  %v276_v8 = vld [vmem:[%s1905_s17 + $0x28] sm:$0xff] }
  0x7f   : > { %v1523_v3 = vld [vmem:[#allocation5 + $0x1b0] sm:$0xff]   ;;  %v1525_v5 = vld [vmem:[#allocation5 + $0x1f8] sm:$0xff]   ;;  %v284_v10 = vpack.c.bf16 %v276_v8, %v276_v8  ;;  %v275_v12 = vld [vmem:[%s1905_s17 + $0x20] sm:$0xff] }
  0x80   : > { %1287 = vmatpush3.bf16.msra.mxu0 %v1486_v22  ;;  %v1526_v6 = vld [vmem:[#allocation5 + $0x138] sm:$0xff]   ;;  %v277_v13 = vld [vmem:[%s1905_s17 + $0x30] sm:$0xff]  ;;  %v283_v14 = vpack.c.bf16 %v275_v12, %v275_v12  ;;  %v1528_v16 = vld [vmem:[#allocation7] sm:$0xff]  }
  0x81   : > { %1309 = vmatpush3.bf16.msra.mxu1 %v1487_v23  ;;  %1288 = vmatprep.subr.bf16.mxu0 %v1488_v24  ;;  %v1527_v7 = vld [vmem:[#allocation5 + $0x1b8] sm:$0xff]   ;;  %v285_v15 = vpack.c.bf16 %v277_v13, %v277_v13  ;;  %v1529_v18 = vld [vmem:[#allocation7 + $0x8] sm:$0xff]   ;;  %v1530_v19 = vld [vmem:[#allocation7 + $0x10] sm:$0xff]  }
  0x82   : > { %1310 = vmatprep.subr.bf16.mxu1 %v1489_v25  ;;  %v278_v9 = vld [vmem:[%s1905_s17 + $0x38] sm:$0xff]  ;;  %v1532_v21 = vld [vmem:[#allocation7 + $0x20] sm:$0xff]   ;;  %v1533_v22 = vld [vmem:[#allocation7 + $0x28] sm:$0xff]   ;;  %s1628_s17 = scalar_lea.vmem %s1627_s29, 256 }
  0x83   : > { %v286_v11 = vpack.c.bf16 %v278_v9, %v278_v9  ;;  %v1531_v20 = vld [vmem:[#allocation7 + $0x18] sm:$0xff]   ;;  %v1534_v23 = vld [vmem:[#allocation7 + $0x30] sm:$0xff]   ;;  %p1630_p9 = scmp.lt.s32.totalorder %s1628_s17, %s1622_s22 }
  0x84   : > { %1289 = vmatpush3.bf16.msra.mxu0 %v1490_v26  ;;  %v1535_v24 = vld [vmem:[#allocation7 + $0x38] sm:$0xff]  }
  0x85   : > { %1311 = vmatpush3.bf16.msra.mxu1 %v1491_v27  ;;  %1290 = vmatprep.subr.bf16.mxu0 %v1492_v28  ;;  %v1197_v27 = vld [vmem:[%s1980_s2] ss:$0 sm:$0xff]  ;;  %p1631_p12 = por %p1630_p9, %p1629_p7 }
  0x86   : > { %1312 = vmatprep.subr.bf16.mxu1 %v1493_v29 }
  0x87   : > { %p1632_p2 = pnand %p1631_p12, %p1625_p3 }
  0x88   : > { %1291 = vmatpush3.bf16.msra.mxu0 %v1494_v30 }
  0x89   : > { %1313 = vmatpush3.bf16.msra.mxu1 %v1495_v31  ;;  %1320 = vmatprep.subr.bf16.mxu0 %v1496_v40 }
  0x8a   : > { %1342 = vmatprep.subr.bf16.mxu1 %v1497_v41 }
  0x8b   : > { %839 = vmatmul.mubr.bf16.vlgmr.msra.gmra.mrb[0].mxu0 %v279_v37 }
  0x8c   : > { %879 = vmatmul.mubr.bf16.vlgmr.msra.gmra.mrb[0].mxu1 %v281_v39  ;;  %1321 = vmatpush3.bf16.msra.mxu0 %v1498_v42 }
  0x8d   : > { %1343 = vmatpush3.bf16.msra.mxu1 %v1499_v43  ;;  %1322 = vmatprep.subr.bf16.mxu0 %v1500_v44 }
  0x8e   : > { %1344 = vmatprep.subr.bf16.mxu1 %v1501_v45  ;;  %918 = vmatprep.mubr.bf16.mxu0 %v284_v10 }
  0x8f   : > { %958 = vmatprep.mubr.bf16.mxu1 %v286_v11 }
  0x90   : > { %1323 = vmatpush3.bf16.msra.mxu0 %v1502_v46 }
  0x91   : > { %1345 = vmatpush3.bf16.msra.mxu1 %v1503_v47  ;;  %1324 = vmatprep.subr.bf16.mxu0 %v1504_v48 }
  0x92   : > { %1346 = vmatprep.subr.bf16.mxu1 %v1505_v49 }
  0x94   : > { %1325 = vmatpush3.bf16.msra.mxu0 %v1506_v50 }
  0x95   : > { %1347 = vmatpush3.bf16.msra.mxu1 %v1507_v51  ;;  %1326 = vmatprep.subr.bf16.mxu0 %v1508_v52  ;;  %v1262_v52 = vld [vmem:[%s1982_s4] ss:$0 sm:$0xff] }
  0x96   : > { %1348 = vmatprep.subr.bf16.mxu1 %v1509_v53 }
  0x98   : > { %1327 = vmatpush3.bf16.msra.mxu0 %v1510_v54 }
  0x99   : > { %1349 = vmatpush3.bf16.msra.mxu1 %v1511_v55  ;;  %1328 = vmatprep.subr.bf16.mxu0 %v1512_v56 }
  0x9a   : > { %1350 = vmatprep.subr.bf16.mxu1 %v1513_v57 }
  0x9c   : > { %1329 = vmatpush3.bf16.msra.mxu0 %v1514_v58 }
  0x9d   : > { %1351 = vmatpush3.bf16.msra.mxu1 %v1515_v59  ;;  %1330 = vmatprep.subr.bf16.mxu0 %v1516_v60 }
  0x9e   : > { %1352 = vmatprep.subr.bf16.mxu1 %v1517_v61 }
  0xa0   : > { %1331 = vmatpush3.bf16.msra.mxu0 %v1518_v62 }
  0xa1   : > { %1353 = vmatpush3.bf16.msra.mxu1 %v1519_v63  ;;  %1332 = vmatprep.subr.bf16.mxu0 %v1520_v0 }
  0xa2   : > { %1354 = vmatprep.subr.bf16.mxu1 %v1521_v1 }
  0xa4   : > { %1333 = vmatpush3.bf16.msra.mxu0 %v1522_v2 }
  0xa5   : > { %1355 = vmatpush3.bf16.msra.mxu1 %v1523_v3  ;;  %1334 = vmatprep.subr.bf16.mxu0 %v1524_v4 }
  0xa6   : > { %1356 = vmatprep.subr.bf16.mxu1 %v1525_v5 }
  0xa8   : > { %1335 = vmatpush3.bf16.msra.mxu0 %v1526_v6 }
  0xa9   : > { %1357 = vmatpush3.bf16.msra.mxu1 %v1527_v7  ;;  %1373 = vmatprep.subr.bf16.mxu0 %v1699_v17 }
  0xab   : > { %919 = vmatmul.mubr.bf16.vlgmr.msra.gmra.mrb[4].mxu0 %v283_v14 }
  0xac   : > { %959 = vmatmul.mubr.bf16.vlgmr.msra.gmra.mrb[4].mxu1 %v285_v15  ;;  %1374 = vmatpush3.bf16.msra.mxu0 %v1528_v16 }
  0xad   : > { %1375 = vmatprep.subr.bf16.mxu0 %v1699_v17  ;;  %1389 = vmatprep.mubr.msk.bf16.mxu0 %vm1700_vm0, %v1699_v17 }
  0xb0   : > { %1376 = vmatpush3.bf16.msra.mxu0 %v1529_v18 }
  0xb1   : > { %1377 = vmatprep.subr.bf16.mxu0 %v1699_v17 }
  0xb4   : > { %1378 = vmatpush3.bf16.msra.mxu0 %v1530_v19 }
  0xb5   : > { %1379 = vmatprep.subr.bf16.mxu0 %v1699_v17 }
  0xb8   : > { %1380 = vmatpush3.bf16.msra.mxu0 %v1531_v20 }
  0xb9   : > { %1381 = vmatprep.subr.bf16.mxu0 %v1699_v17 }
  0xbc   : > { %1382 = vmatpush3.bf16.msra.mxu0 %v1532_v21 }
  0xbd   : > { %1383 = vmatprep.subr.bf16.mxu0 %v1699_v17 }
  0xc0   : > { %1384 = vmatpush3.bf16.msra.mxu0 %v1533_v22 }
  0xc1   : > { %1385 = vmatprep.subr.bf16.mxu0 %v1699_v17 }
  0xc4   : > { %1386 = vmatpush3.bf16.msra.mxu0 %v1534_v23 }
  0xc5   : > { %1387 = vmatprep.subr.bf16.mxu0 %v1699_v17 }
  0xc8   : > { %1388 = vmatpush3.bf16.msra.mxu0 %v1535_v24 }
 0x15e   : > { %v1292_v25 = vpop.f32.mrb[0].mxu0 }
 0x15f   : > { %v1314_v26 = vpop.f32.mrb[0].mxu1  ;;  %v1293_v28 = vpop.f32.mrb[1].mxu0 }
 0x160   : > { %v1315_v29 = vpop.f32.mrb[1].mxu1  ;;  %v1294_v30 = vadd.f32 %v1293_v28, %v1292_v25  ;;  %v1295_v32 = vpop.f32.mrb[2].mxu0 }
 0x161   : > { %v1316_v31 = vadd.f32 %v1315_v29, %v1314_v26  ;;  %v1317_v33 = vpop.f32.mrb[2].mxu1  ;;  %v1296_v34 = vpop.f32.mrb[3].mxu0 }
 0x162   : > { %v1318_v35 = vpop.f32.mrb[3].mxu1  ;;  %v841_v36 = vadd.f32 %v1294_v30, %v1197_v27 }
 0x164   : > { %v881_v37 = vadd.f32 %v1316_v31, %v841_v36 }
 0x17e   : > { %v1336_v38 = vpop.f32.mrb[4].mxu0 }
 0x17f   : > { %v1358_v39 = vpop.f32.mrb[4].mxu1  ;;  %v1337_v40 = vpop.f32.mrb[5].mxu0 }
 0x180   : > { %v1338_v41 = vadd.f32 %v1337_v40, %v1336_v38  ;;  %v1359_v42 = vpop.f32.mrb[5].mxu1  ;;  %v1339_v43 = vpop.f32.mrb[6].mxu0 }
 0x181   : > { %v1360_v44 = vadd.f32 %v1359_v42, %v1358_v39  ;;  %v1361_v45 = vpop.f32.mrb[6].mxu1  ;;  %v1340_v46 = vpop.f32.mrb[7].mxu0 }
 0x182   : > { %v921_v47 = vadd.f32 %v1338_v41, %v881_v37  ;;  %v1362_v48 = vpop.f32.mrb[7].mxu1 }
 0x184   : > { %v961_v49 = vadd.f32 %v1360_v44, %v921_v47 }
 0x186   : > { %v966_v50 = vmax.f32 %v961_v49, 0.0 }
 0x188   : > { %v967_v51 = vpack.c.bf16 %v966_v50, %v966_v50 }
 0x18a   : > { %1390 = vmatmul.mubr.bf16.vlgmr.msra.gmra.mrb[8].mxu0 %v967_v51 }
 0x25d   : > { %v1073_v53 = vpop.f32.mrb[8].mxu0 }
 0x25e   : > { %v1074_v54 = vadd.f32 %v1262_v52, %v1073_v53  ;;  %v1391_v55 = vpop.f32.mrb[9].mxu0 }
 0x25f   : > { %v1076_v56 = vpop.f32.mrb[10].mxu0 }
 0x260   : > { %v1079_v57 = vmax.f32 %v1074_v54, 0.0  ;;  %v1392_v58 = vpop.f32.mrb[11].mxu0 }
 0x262   : > { %1080 = vst [vmem:[%s269_s7] sm:$0xff] %v1079_v57 }
 0x263   : > { %1635 = shalt.err (!%p1632_p2)
}
 0x264   : > { %s1636_s12 = scalar_lea.hbm %s1934_s16, 128  ;;  %s1640_s8 = scalar_lea.hbm %s1983_s5, 256 }
 0x265   : > { %p1637_p13 = scmp.ne.s32.totalorder %s1934_s16, %s1636_s12  ;;  %p1641_p4 = scmp.lt.u32.totalorder %s1934_s16, %s1983_s5 }
 0x266   : > { %p1642_p5 = scmp.lt.u32.totalorder %s1640_s8, %s1636_s12  ;;  %p1644_p11 = scmp.lt.u32.totalorder %s1636_s12, %s1934_s16 }
 0x267   : > { %p1638_p6 = pnand %p1637_p13, %p1997_p0 }
 0x268   : > { %p1643_p8 = por %p1642_p5, %p1641_p4 }
 0x269   : > { %p1639_p10 = pneg %p1638_p6 }
 0x26a   : > { %p1645_p1 = por %p1644_p11, %p1643_p8 }
 0x26c   : > { %p1646_p3 = pnand %p1645_p1, %p1639_p10 }
 0x26e   : > { %1649 = shalt.err (!%p1646_p3)
}
 0x26f   : > { %1403 = dma.vmem_to_hbm [thread:$0]  (%p1997_p0), %s1936_s6, 128, %s1934_s16, %s1082_s9  }
 0x270 PF: > { %s1107_s28 = sand.u32 1, %s1680_s18   ;;  %p1998_p7 = scmp.ne.s32.totalorder %s1988_s25, 0 }
 0x271   : > { %p1999_p9 = scmp.ge.s32.totalorder %s1692_s21, 2  ;;  %s1108_s7 = scalar_lea.sflag [#allocation4], %s1107_s28 }
 0x273   : > { %p1417_p12 = pnand %p1999_p9, %p1998_p7 }
 0x275   : > { %1675 = dma.done.wait (!%p1417_p12), %s1108_s7, 128  }
 0x276   : > { %1677 = vsyncadd (!%p1417_p12), %s1108_s7, 4294967168  ;;  %p19_p2 = scmp.ge.s32.totalorder %s1842_s14, 4   ;;  %s2000_s18 = smov %s1684_s19 }
 0x277   : > { %s2001_s19 = smov %s1688_s20  ;;  %s2002_s20 = smov %s1858_s27 }
 0x278   : > { %s2003_s21 = smov %s1842_s14  ;;  %21 = sbr.rel (!%p19_p2) target bundleno = 6 (0x6), region = 93 }
 0x27f   :  { %1113 = vsyncpa [#allocation3], 1 }
 0x280   :  { %1115 = vsyncpa [#allocation3 + $0x1], 1 }
 0x281   :  { %1116 = vsyncpa [#allocation6], 1 }
 0x282   :  { %1117 = vsyncpa [#allocation4], 1 }
 0x283   :  { %1119 = vsyncpa [#allocation4 + $0x1], 1 }

</bundles_post_ra>
